<compile_context>
chip_gen: v6e
topology: v6e:2x2x1
jax: 0.10.0
libtpu: 0.0.40
codegen_flags: <defaults>
</compile_context>

<pallas_src>
import math

import jax
import jax.numpy as jnp
import numpy as np
from jax.experimental import pallas as pl
from jax.experimental.pallas import tpu as pltpu


_INV_SQRT2 = 0.7071067811865476


def _erf(x):
    """Abramowitz & Stegun 7.1.26 erf approximation, |error| <= 1.5e-7.

    Built only from abs/mul/add/div/exp/where so it lowers cleanly in Mosaic; at
    float32 it is numerically indistinguishable (at 1e-5 tolerance) from the exact
    erf that torch.nn.GELU() (default, non-approximate form) uses.
    """
    a1, a2, a3, a4, a5 = (0.254829592, -0.284496736, 1.421413741,
                          -1.453152027, 1.061405429)
    p = 0.3275911
    ax = jnp.abs(x)
    t = 1.0 / (1.0 + p * ax)
    poly = t * (a1 + t * (a2 + t * (a3 + t * (a4 + t * a5))))
    y = 1.0 - poly * jnp.exp(-ax * ax)
    return jnp.where(x >= 0.0, y, -y)


def _gelu_exact(x):
    """torch.nn.GELU() default: 0.5 * x * (1 + erf(x / sqrt(2)))."""
    return 0.5 * x * (1.0 + _erf(x * _INV_SQRT2))


def pixel_attention_kernel(x_ref, w1t_ref, w2t_ref, o_ref):
    """Fused gate-MLP + residual for one row tile (possibly lane-folded).

    x_ref:   (TM, Lf)   rows = (possibly folded) flattened (batch, io_channels)
    w1t_ref: (Lf, L2f)  first 1x1 conv weight, transposed (block-diagonal if folded)
    w2t_ref: (L2f, Lf)  second 1x1 conv weight, transposed (block-diagonal if folded)
    o_ref:   (TM, Lf)
    """
    x = x_ref[...].astype(jnp.float32)
    h = jnp.dot(x, w1t_ref[...], preferred_element_type=jnp.float32)    # (TM, L2f)
    h = _gelu_exact(h)
    s = jnp.dot(h, w2t_ref[...], preferred_element_type=jnp.float32)    # (TM, Lf)
    gate = 1.0 / (1.0 + jnp.exp(-s))                                    # sigmoid
    o_ref[...] = (x * (1.0 + gate)).astype(o_ref.dtype)                 # xp + xp * g


def _choose_fold(rows, l, lane_target=256):
    """Largest G with (G*L) % 128 == 0, G | rows and G*L <= lane_target (else 1)."""
    if l >= 128:
        return 1
    g = 128 // math.gcd(l, 128)
    if g * l > lane_target or rows % g != 0:
        return 1
    while (2 * g) * l <= lane_target and rows % (2 * g) == 0:
        g *= 2
    return g


def _choose_row_tile(rows_f, lane_width, itemsize, target_block_bytes=2 << 20):
    """~target_block_bytes per input block, 8-aligned, >=2 grid steps when possible."""
    if rows_f <= 8:
        return rows_f                                    # single full-extent block
    bytes_per_row = lane_width * itemsize
    tile = max(8, (target_block_bytes // bytes_per_row) // 8 * 8)
    two_step = -(-((rows_f + 1) // 2) // 8) * 8          # ceil(rows_f/2), 8-aligned
    tile = min(tile, two_step)                           # >=2 steps (v7x: 2 TCs)
    if tile >= rows_f:
        tile = rows_f                                    # full extent is always legal
    return tile


def transformer_layer2_forward(x, w1, w2, *, target_block_bytes=2 << 20):
    """TransformerLayer2 (PixelAttention path) forward.

    x:  (N, C, L) float32, C = io_channels, L = seq_len
    w1: (L // ratio, L)  Conv1d(L, L//ratio, 1, bias=False) weight, kernel dim squeezed
    w2: (L, L // ratio)  Conv1d(L//ratio, L, 1, bias=False) weight, kernel dim squeezed
    returns (N, C, L)
    """
    n, c, l = x.shape
    l2 = w1.shape[0]
    assert w1.shape == (l2, l) and w2.shape == (l, l2), (w1.shape, w2.shape)

    rows = n * c

    # ---- lane-dense fold: pack G rows into one folded row of width G*L -------------
    g = _choose_fold(rows, l)
    rows_f = rows // g
    lf = g * l
    l2f = g * l2

    x2 = x.reshape(rows_f, lf)          # contiguous reshape: no HBM pass, no pad

    w1t = jnp.transpose(w1)             # (L, L2)
    w2t = jnp.transpose(w2)             # (L2, L)
    if g > 1:
        eye = jnp.eye(g, dtype=w1.dtype)
        w1t = jnp.einsum("gh,ij->gihj", eye, w1t).reshape(lf, l2f)   # block-diag
        w2t = jnp.einsum("gh,ij->gihj", eye, w2t).reshape(l2f, lf)   # block-diag

    # ---- byte-sized row tile + cdiv grid (no wrapper padding) ----------------------
    row_tile = _choose_row_tile(rows_f, lf, x.dtype.itemsize, target_block_bytes)
    grid = pl.cdiv(rows_f, row_tile)

    # Constant-index weights are fetched once; for large L skip double-buffering them
    # so the saved VMEM (matters on v7x 64 MiB / v5e 16 MiB scoped) feeds bigger tiles.
    weight_bytes = lf * l2f * w1.dtype.itemsize
    w_kwargs = {"pipeline_mode": pl.Buffered(1)} if weight_bytes > (4 << 20) else {}

    out = pl.pallas_call(
        pixel_attention_kernel,
        out_shape=jax.ShapeDtypeStruct((rows_f, lf), x.dtype),
        grid=(grid,),
        in_specs=[
            pl.BlockSpec((row_tile, lf), lambda i: (i, 0)),
            pl.BlockSpec((lf, l2f), lambda i: (0, 0), **w_kwargs),
            pl.BlockSpec((l2f, lf), lambda i: (0, 0), **w_kwargs),
        ],
        out_specs=pl.BlockSpec((row_tile, lf), lambda i: (i, 0)),
        compiler_params=pltpu.CompilerParams(
            dimension_semantics=("parallel",),
        ),
    )(x2, w1t, w2t)

    return out.reshape(n, c, l)


def reference_forward(x, w1, w2):
    """Pure-JAX mirror of the PyTorch module (permute -> PixelAttention -> +x -> permute)."""
    hp = jax.lax.Precision.HIGHEST
    xp = jnp.transpose(x, (0, 2, 1))                        # (N, L, C)
    h = jnp.einsum("oi,nic->noc", w1, xp, precision=hp)     # Conv1d(L, L2, 1, bias=False)
    h = jax.nn.gelu(h, approximate=False)                   # nn.GELU() exact (erf) form
    s = jnp.einsum("oi,nic->noc", w2, h, precision=hp)      # Conv1d(L2, L, 1, bias=False)
    gate = jax.nn.sigmoid(s)
    out_p = xp + xp * gate                                  # x1 = x + x * x_weight
    return jnp.transpose(out_p, (0, 2, 1))


if __name__ == "__main__":
    # Small shapes consistent with the module: x is (batch, io_channels, seq_len).
    N, IO_CHANNELS, SEQ_LEN = 2, 4, 16
    RATIO = 2                      # PixelAttention default ratio
    HIDDEN = SEQ_LEN // RATIO      # 1x1-conv bottleneck (channels = seq_len after permute)
    FEEDFORWARD_DIM = 32           # unused by the PixelAttention path
    DROP_RATE = 0.1                # unused by the PixelAttention path

    key = jax.random.PRNGKey(0)
    kx, k1, k2 = jax.random.split(key, 3)
    x = jax.random.normal(kx, (N, IO_CHANNELS, SEQ_LEN), dtype=jnp.float32)
    # torch Conv1d(kernel_size=1, bias=False) weights are (out_ch, in_ch, 1); stored
    # here with the trailing kernel-size-1 dim squeezed.
    w1 = 0.1 * jax.random.normal(k1, (HIDDEN, SEQ_LEN), dtype=jnp.float32)
    w2 = 0.1 * jax.random.normal(k2, (SEQ_LEN, HIDDEN), dtype=jnp.float32)

    out = jax.block_until_ready(transformer_layer2_forward(x, w1, w2))
    ref = reference_forward(x, w1, w2)

    assert out.shape == (N, IO_CHANNELS, SEQ_LEN), out.shape
    np.testing.assert_allclose(np.asarray(out), np.asarray(ref), atol=1e-5, rtol=1e-4)

    print("KERNEL_OK")
</pallas_src>

<mosaic_0001>
module attributes {stable_mosaic.version = 11 : i64} {
  func.func @pixel_attention_kernel(%arg0: i32, %arg1: memref<1x128xf32, #tpu.memory_space<vmem>>, %arg2: memref<128x64xf32, #tpu.memory_space<vmem>>, %arg3: memref<64x128xf32, #tpu.memory_space<vmem>>, %arg4: memref<1x128xf32, #tpu.memory_space<vmem>>) attributes {dimension_semantics = [#tpu.dimension_semantics<parallel>], iteration_bounds = array<i64: 1>, scalar_prefetch = 0 : i64, scratch_operands = 0 : i64, tpu.core_type = #tpu.core_type<tc>, window_params = [{transform_indices = @transform_0, window_bounds = array<i64: 1, 128>}, {pipeline_mode = #tpu.pipeline_mode<synchronous>, transform_indices = @transform_1, window_bounds = array<i64: 128, 64>}, {pipeline_mode = #tpu.pipeline_mode<synchronous>, transform_indices = @transform_2, window_bounds = array<i64: 64, 128>}, {transform_indices = @transform_3, window_bounds = array<i64: 1, 128>}]} {
    %c0 = arith.constant 0 : index
    %c0_0 = arith.constant 0 : index
    %0 = vector.load %arg1[%c0, %c0_0] : memref<1x128xf32, #tpu.memory_space<vmem>>, vector<1x128xf32>
    %c0_1 = arith.constant 0 : index
    %c0_2 = arith.constant 0 : index
    %1 = vector.load %arg2[%c0_1, %c0_2] : memref<128x64xf32, #tpu.memory_space<vmem>>, vector<128x64xf32>
    %cst = arith.constant dense<0.000000e+00> : vector<1x64xf32>
    %2 = tpu.matmul %0, %1, %cst {dimension_numbers = #tpu.dot_dimension_numbers<[1], [0], [0], [1], [0, 0, 1, 1], [], []>} : vector<1x128xf32>, vector<128x64xf32>, vector<1x64xf32> -> vector<1x64xf32>
    %cst_3 = arith.constant 5.000000e-01 : f32
    %3 = vector.broadcast %cst_3 : f32 to vector<1x64xf32>
    %4 = arith.mulf %3, %2 : vector<1x64xf32>
    %cst_4 = arith.constant 0.707106769 : f32
    %5 = vector.broadcast %cst_4 : f32 to vector<1x64xf32>
    %6 = arith.mulf %2, %5 : vector<1x64xf32>
    %7 = math.absf %6 : vector<1x64xf32>
    %cst_5 = arith.constant 0.327591091 : f32
    %8 = vector.broadcast %cst_5 : f32 to vector<1x64xf32>
    %9 = arith.mulf %8, %7 : vector<1x64xf32>
    %cst_6 = arith.constant 1.000000e+00 : f32
    %10 = vector.broadcast %cst_6 : f32 to vector<1x64xf32>
    %11 = arith.addf %10, %9 : vector<1x64xf32>
    %cst_7 = arith.constant 1.000000e+00 : f32
    %12 = vector.broadcast %cst_7 : f32 to vector<1x64xf32>
    %13 = arith.divf %12, %11 : vector<1x64xf32>
    %cst_8 = arith.constant 1.06140542 : f32
    %14 = vector.broadcast %cst_8 : f32 to vector<1x64xf32>
    %15 = arith.mulf %13, %14 : vector<1x64xf32>
    %cst_9 = arith.constant -1.45315206 : f32
    %16 = vector.broadcast %cst_9 : f32 to vector<1x64xf32>
    %17 = arith.addf %16, %15 : vector<1x64xf32>
    %18 = arith.mulf %13, %17 : vector<1x64xf32>
    %cst_10 = arith.constant 1.42141378 : f32
    %19 = vector.broadcast %cst_10 : f32 to vector<1x64xf32>
    %20 = arith.addf %19, %18 : vector<1x64xf32>
    %21 = arith.mulf %13, %20 : vector<1x64xf32>
    %cst_11 = arith.constant -0.284496725 : f32
    %22 = vector.broadcast %cst_11 : f32 to vector<1x64xf32>
    %23 = arith.addf %22, %21 : vector<1x64xf32>
    %24 = arith.mulf %13, %23 : vector<1x64xf32>
    %cst_12 = arith.constant 0.254829586 : f32
    %25 = vector.broadcast %cst_12 : f32 to vector<1x64xf32>
    %26 = arith.addf %25, %24 : vector<1x64xf32>
    %27 = arith.mulf %13, %26 : vector<1x64xf32>
    %cst_13 = arith.constant 0.000000e+00 : f32
    %28 = vector.broadcast %cst_13 : f32 to vector<1x64xf32>
    %29 = arith.subf %28, %7 : vector<1x64xf32>
    %30 = arith.mulf %29, %7 : vector<1x64xf32>
    %31 = math.exp %30 : vector<1x64xf32>
    %32 = arith.mulf %27, %31 : vector<1x64xf32>
    %cst_14 = arith.constant 1.000000e+00 : f32
    %33 = vector.broadcast %cst_14 : f32 to vector<1x64xf32>
    %34 = arith.subf %33, %32 : vector<1x64xf32>
    %cst_15 = arith.constant 0.000000e+00 : f32
    %35 = vector.broadcast %cst_15 : f32 to vector<1x64xf32>
    %36 = arith.cmpf oge, %6, %35 : vector<1x64xf32>
    %cst_16 = arith.constant 0.000000e+00 : f32
    %37 = vector.broadcast %cst_16 : f32 to vector<1x64xf32>
    %38 = arith.subf %37, %34 : vector<1x64xf32>
    %39 = arith.select %36, %34, %38 : vector<1x64xi1>, vector<1x64xf32>
    %cst_17 = arith.constant 1.000000e+00 : f32
    %40 = vector.broadcast %cst_17 : f32 to vector<1x64xf32>
    %41 = arith.addf %40, %39 : vector<1x64xf32>
    %42 = arith.mulf %4, %41 : vector<1x64xf32>
    %c0_18 = arith.constant 0 : index
    %c0_19 = arith.constant 0 : index
    %43 = vector.load %arg3[%c0_18, %c0_19] : memref<64x128xf32, #tpu.memory_space<vmem>>, vector<64x128xf32>
    %cst_20 = arith.constant dense<0.000000e+00> : vector<1x128xf32>
    %44 = tpu.matmul %42, %43, %cst_20 {dimension_numbers = #tpu.dot_dimension_numbers<[1], [0], [0], [1], [0, 0, 1, 1], [], []>} : vector<1x64xf32>, vector<64x128xf32>, vector<1x128xf32> -> vector<1x128xf32>
    %cst_21 = arith.constant 0.000000e+00 : f32
    %45 = vector.broadcast %cst_21 : f32 to vector<1x128xf32>
    %46 = arith.subf %45, %44 : vector<1x128xf32>
    %47 = math.exp %46 : vector<1x128xf32>
    %cst_22 = arith.constant 1.000000e+00 : f32
    %48 = vector.broadcast %cst_22 : f32 to vector<1x128xf32>
    %49 = arith.addf %48, %47 : vector<1x128xf32>
    %cst_23 = arith.constant 1.000000e+00 : f32
    %50 = vector.broadcast %cst_23 : f32 to vector<1x128xf32>
    %51 = arith.divf %50, %49 : vector<1x128xf32>
    %cst_24 = arith.constant 1.000000e+00 : f32
    %52 = vector.broadcast %cst_24 : f32 to vector<1x128xf32>
    %53 = arith.addf %52, %51 : vector<1x128xf32>
    %54 = arith.mulf %0, %53 : vector<1x128xf32>
    %c0_25 = arith.constant 0 : index
    %c0_26 = arith.constant 0 : index
    %55 = vector.load %arg4[%c0_25, %c0_26] : memref<1x128xf32, #tpu.memory_space<vmem>>, vector<1x128xf32>
    tpu.vector_store %arg4[%c0_25, %c0_26], %54 {strides = array<i32>} : memref<1x128xf32, #tpu.memory_space<vmem>>, vector<1x128xf32>,
    return
  }
  func.func @transform_0(%arg0: i32) -> (i32, i32) {
    %c0_i32 = arith.constant 0 : i32
    %c0_i32_0 = arith.constant 0 : i32
    return %arg0, %c0_i32 : i32, i32
  }
  func.func @transform_1(%arg0: i32) -> (i32, i32) {
    %c0_i32 = arith.constant 0 : i32
    %c0_i32_0 = arith.constant 0 : i32
    %c0_i32_1 = arith.constant 0 : i32
    return %c0_i32, %c0_i32_0 : i32, i32
  }
  func.func @transform_2(%arg0: i32) -> (i32, i32) {
    %c0_i32 = arith.constant 0 : i32
    %c0_i32_0 = arith.constant 0 : i32
    %c0_i32_1 = arith.constant 0 : i32
    return %c0_i32, %c0_i32_0 : i32, i32
  }
  func.func @transform_3(%arg0: i32) -> (i32, i32) {
    %c0_i32 = arith.constant 0 : i32
    %c0_i32_0 = arith.constant 0 : i32
    return %arg0, %c0_i32 : i32, i32
  }
}

</mosaic_0001>

<bundles_post_ra>
// kernel: tpu_custom_call.1
= control target key start
LH: loop header
LB: loop body
LE: loop exit
PB: predicated region body
PF: predicated region fallthrough
CT: control target
= control target key end

     0   :  { %v348_v1 = vmov 0.0   ;;  %vm349_vm0 = vmmov 0   ;;  %s479_s0 = inlined_call_operand.vmem [shape: f32[1,128], index: 0, kind: input, shape index: {}]   ;;  %s480_s1 = inlined_call_operand.vmem [shape: f32[128,64], index: 1, kind: input, shape index: {}]   ;;  %s481_s2 = inlined_call_operand.vmem [shape: f32[64,128], index: 2, kind: input, shape index: {}]   ;;  %s482_s3 = inlined_call_operand.hbm [shape: f32[1,128], index: 3, kind: output, shape index: {}]  }
   0x1   :  { %v31_v0 = vld [vmem:[%s480_s1 + $0x78] sm:$0xff]  ;;  %261 = vmatprep.subr.mxu0 %v348_v1  ;;  %v30_v2 = vld [vmem:[%s480_s1 + $0x70] sm:$0xff]  ;;  %293 = vmatprep.mubr.msk.f32.mxu0 %vm349_vm0, %v348_v1  ;;  %v29_v3 = vld [vmem:[%s480_s1 + $0x68] sm:$0xff] }
   0x2   :  { %262 = vmatpush3.msra.mxu0 %v31_v0  ;;  %296 = vmatprep.subr.mxu1 %v348_v1  ;;  %v28_v4 = vld [vmem:[%s480_s1 + $0x60] sm:$0xff] }
   0x3   :  { %263 = vmatprep.subr.mxu0 %v348_v1  ;;  %312 = vmatprep.mubr.msk.f32.mxu1 %vm349_vm0, %v348_v1 }
   0x4   :  { %264 = vmatpush3.msra.mxu0 %v30_v2 }
   0x5   :  { %265 = vmatprep.subr.mxu0 %v348_v1 }
   0x6   :  { %8 = vsyncpa [#allocation3], 0  ;;  %266 = vmatpush3.msra.mxu0 %v29_v3  ;;  %v27_v5 = vld [vmem:[%s480_s1 + $0x58] sm:$0xff]  ;;  %v26_v6 = vld [vmem:[%s480_s1 + $0x50] sm:$0xff]  ;;  %vm137_vm2 = vcmask 523264  }
   0x7   :  { %267 = vmatprep.subr.mxu0 %v348_v1  ;;  %v25_v7 = vld [vmem:[%s480_s1 + $0x48] sm:$0xff]  ;;  %v24_v8 = vld [vmem:[%s480_s1 + $0x40] sm:$0xff]  ;;  %v23_v9 = vld [vmem:[%s480_s1 + $0x38] sm:$0xff] }
   0x8   :  { %268 = vmatpush3.msra.mxu0 %v28_v4  ;;  %v22_v10 = vld [vmem:[%s480_s1 + $0x30] sm:$0xff]  ;;  %v21_v11 = vld [vmem:[%s480_s1 + $0x28] sm:$0xff]  ;;  %v20_v12 = vld [vmem:[%s480_s1 + $0x20] sm:$0xff] }
   0x9   :  { %269 = vmatprep.subr.mxu0 %v348_v1  ;;  %v19_v13 = vld [vmem:[%s480_s1 + $0x18] sm:$0xff]  ;;  %v18_v14 = vld [vmem:[%s480_s1 + $0x10] sm:$0xff]  ;;  %v17_v15 = vld [vmem:[%s480_s1 + $0x8] sm:$0xff] }
   0xa   :  { %270 = vmatpush3.msra.mxu0 %v27_v5  ;;  %v16_v16 = vld [vmem:[%s480_s1] sm:$0xff]  ;;  %v136_v18 = vld [vmem:[%s481_s2 + $0x38] sm:$0xff]  ;;  %v135_v19 = vld [vmem:[%s481_s2 + $0x30] sm:$0xff] }
   0xb   :  { %271 = vmatprep.subr.mxu0 %v348_v1  ;;  %v440_v17 = vld [vmem:[%s479_s0] sm:$0x1]  ;;  %297 = vmatpush3.msra.mxu1 %v136_v18  ;;  %v134_v20 = vld [vmem:[%s481_s2 + $0x28] sm:$0xff]  ;;  %v132_v22 = vld [vmem:[%s481_s2 + $0x18] sm:$0xff] }
   0xc   :  { %272 = vmatpush3.msra.mxu0 %v26_v6  ;;  %298 = vmatprep.subr.mxu1 %v348_v1  ;;  %v133_v21 = vld [vmem:[%s481_s2 + $0x20] sm:$0xff]  ;;  %v131_v23 = vld [vmem:[%s481_s2 + $0x10] sm:$0xff]  ;;  %v130_v24 = vld [vmem:[%s481_s2 + $0x8] sm:$0xff] }
   0xd   :  { %273 = vmatprep.subr.mxu0 %v348_v1  ;;  %299 = vmatpush3.msra.mxu1 %v135_v19  ;;  %v129_v25 = vld [vmem:[%s481_s2] sm:$0xff]  ;;  %s350_s2 = smov [#allocation2]  }
   0xe   :  { %274 = vmatpush3.msra.mxu0 %v25_v7  ;;  %300 = vmatprep.subr.mxu1 %v348_v1  ;;  %s226_s6 = sshll.u32 %s350_s2, 4  ;;  %s227_s6 = int_to_ptr.vmem [resolvable:$true] %s226_s6 }
   0xf   :  { %275 = vmatprep.subr.mxu0 %v348_v1  ;;  %301 = vmatpush3.msra.mxu1 %v134_v20  ;;  %s326_s7 = scalar_lea.vmem %s227_s6, 16  ;;  %s330_s8 = scalar_lea.vmem %s227_s6, 32 }
  0x10   :  { %276 = vmatpush3.msra.mxu0 %v24_v8  ;;  %302 = vmatprep.subr.mxu1 %v348_v1  ;;  %p327_p0 = scmp.ne.s32.totalorder %s227_s6, %s326_s7  ;;  %p331_p1 = scmp.lt.s32.totalorder %s227_s6, %s227_s6 }
  0x11   :  { %277 = vmatprep.subr.mxu0 %v348_v1  ;;  %303 = vmatpush3.msra.mxu1 %v133_v21  ;;  %p332_p2 = scmp.lt.s32.totalorder %s330_s8, %s326_s7 }
  0x12   :  { %278 = vmatpush3.msra.mxu0 %v23_v9  ;;  %304 = vmatprep.subr.mxu1 %v348_v1 }
  0x13   :  { %279 = vmatprep.subr.mxu0 %v348_v1  ;;  %305 = vmatpush3.msra.mxu1 %v132_v22  ;;  %p333_p3 = por %p332_p2, %p331_p1 }
  0x14   :  { %280 = vmatpush3.msra.mxu0 %v22_v10  ;;  %306 = vmatprep.subr.mxu1 %v348_v1 }
  0x15   :  { %281 = vmatprep.subr.mxu0 %v348_v1  ;;  %307 = vmatpush3.msra.mxu1 %v131_v23  ;;  %p334_p4 = pnand %p333_p3, %p327_p0 }
  0x16   :  { %282 = vmatpush3.msra.mxu0 %v21_v11  ;;  %308 = vmatprep.subr.mxu1 %v348_v1 }
  0x17   :  { %283 = vmatprep.subr.mxu0 %v348_v1  ;;  %309 = vmatpush3.msra.mxu1 %v130_v24 }
  0x18   :  { %284 = vmatpush3.msra.mxu0 %v20_v12  ;;  %310 = vmatprep.subr.mxu1 %v348_v1 }
  0x19   :  { %285 = vmatprep.subr.mxu0 %v348_v1  ;;  %311 = vmatpush3.msra.mxu1 %v129_v25 }
  0x1a   :  { %286 = vmatpush3.msra.mxu0 %v19_v13 }
  0x1b   :  { %287 = vmatprep.subr.mxu0 %v348_v1 }
  0x1c   :  { %288 = vmatpush3.msra.mxu0 %v18_v14 }
  0x1d   :  { %289 = vmatprep.subr.mxu0 %v348_v1 }
  0x1e   :  { %290 = vmatpush3.msra.mxu0 %v17_v15 }
  0x1f   :  { %291 = vmatprep.subr.mxu0 %v348_v1 }
  0x20   :  { %292 = vmatpush3.msra.mxu0 %v16_v16 }
  0x21   :  { %294 = vmatmul.mubr.f32.vlgmr.msra.gmra.mxu0 %v440_v17 }
  0xe1   :  { %v98_v26 = vpop.f32.mrf.mxu0 }
  0xe2   :  { %v103_v27 = vmul.f32 0.70710677, %v98_v26  ;;  %v102_v50 = vmul.f32 0.5, %v98_v26 }
  0xe3   :  { %v295_v28 = vpop.f32.mrf.mxu0 }
  0xe4   :  { %v104_v29 = vand.u32 2147483647, %v103_v27  ;;  %vm124_vm1 = vcmp.ge.f32.partialorder %v103_v27, 0.0 }
  0xe6   :  { %v105_v30 = vmul.f32 0.3275911, %v104_v29  ;;  %v118_v32 = vsub.f32 0.0, %v104_v29 }
  0xe8   :  { %v106_v31 = vadd.f32 1.0, %v105_v30  ;;  %v119_v33 = vmul.f32 %v118_v32, %v104_v29 }
  0xea   :  { %318 = vrcp.f32 %v106_v31  ;;  %v120_v36 = vmul.f32 1.442695, %v119_v33 }
  0xec   :  { %320 = vpow2.f32 %v120_v36 }
  0xf7   :  { %v319_v34 = vpop.eup %318 }
  0xf8   :  { %v109_v35 = vmul.f32 1.0614054, %v319_v34 }
  0xf9   :  { %v321_v45 = vpop.eup %320 }
  0xfa   :  { %v110_v37 = vadd.f32 -1.4531521, %v109_v35 }
  0xfc   :  { %v111_v38 = vmul.f32 %v319_v34, %v110_v37 }
  0xfe   :  { %v112_v39 = vadd.f32 1.4214138, %v111_v38 }
 0x100   :  { %v113_v40 = vmul.f32 %v319_v34, %v112_v39 }
 0x102   :  { %v114_v41 = vadd.f32 -0.28449672, %v113_v40 }
 0x104   :  { %v115_v42 = vmul.f32 %v319_v34, %v114_v41 }
 0x106   :  { %v116_v43 = vadd.f32 0.2548296, %v115_v42 }
 0x108   :  { %v117_v44 = vmul.f32 %v319_v34, %v116_v43 }
 0x10a   :  { %v122_v46 = vmul.f32 %v321_v45, %v117_v44 }
 0x10c   :  { %v123_v47 = vsub.f32 1.0, %v122_v46 }
 0x10e   :  { %v125_v48 = vsub.f32 0.0, %v123_v47 }
 0x110   :  { %v126_v49 = vsel %vm124_vm1, %v123_v47, %v125_v48 }
 0x111   :  { %v127_v51 = vadd.f32 1.0, %v126_v49 }
 0x113   :  { %v128_v52 = vmul.f32 %v127_v51, %v102_v50 }
 0x115   :  { %313 = vmatmul.mubr.msk.f32.vlgmr.msra.gmra.mxu1 %vm137_vm2, %v128_v52 }
 0x1d5   :  { %v207_v53 = vpop.f32.mrf.mxu1 }
 0x1d6   :  { %v211_v54 = vsub.f32 0.0, %v207_v53 }
 0x1d7   :  { %v314_v55 = vpop.f32.mrf.mxu1 }
 0x1d8   :  { %v212_v56 = vmul.f32 1.442695, %v211_v54 }
 0x1da   :  { %322 = vpow2.f32 %v212_v56 }
 0x1e7   :  { %v323_v57 = vpop.eup %322 }
 0x1e8   :  { %v214_v58 = vadd.f32 1.0, %v323_v57 }
 0x1ea   :  { %324 = vrcp.f32 %v214_v58 }
 0x1f7   :  { %v325_v59 = vpop.eup %324 }
 0x1f8   :  { %v217_v60 = vadd.f32 1.0, %v325_v59 }
 0x1fa   :  { %v218_v61 = vmul.f32 %v217_v60, %v440_v17 }
 0x1fc   :  { %219 = vst [vmem:[#allocation2] sm:$0x1] %v218_v61 }
 0x1fd   :  { %337 = shalt.err (!%p334_p4)
}
 0x1fe   :  { %229 = dma.vmem_to_hbm [thread:$0]  %s227_s6, 16, %s482_s3, [#allocation3]  }
 0x1ff   :  { %346 = dma.done.wait [#allocation3], 16  }
 0x200   :  { %347 = vsyncadd [#allocation3], 4294967280 }
 0x201   :  { %233 = vsyncpa [#allocation3], 1 }

</bundles_post_ra>
